<compile_context>
chip_gen: v7x
topology: tpu7x:2x2x1
jax: 0.10.0
libtpu: 0.0.40
codegen_flags: <defaults>
</compile_context>

<pallas_src>
import functools

import jax
import jax.numpy as jnp
from jax.experimental import pallas as pl
from jax.experimental.pallas import tpu as pltpu


def _round_up(x, m):
    return (x + m - 1) // m * m


def _cdiv(a, b):
    return -(-a // b)


def mfh_kernel(x0_ref, x1_ref,
               w00_ref, b00_ref, w10_ref, b10_ref,
               w01_ref, b01_ref, w11_ref, b11_ref,
               wout0_ref, wout1_ref, bout_ref,
               out_ref, z0_acc, z1_acc, *, elem_dtype):
    f = pl.program_id(1)                      # factor-slab index (inner, "arbitrary")

    x0 = x0_ref[...]
    x1 = x1_ref[...]

    # ---- per-slab projections (+bias, relu); f32 accumulation on the MXU.
    a0 = jnp.maximum(
        jnp.dot(x0, w00_ref[...], preferred_element_type=jnp.float32) + b00_ref[...], 0.0)
    a1 = jnp.maximum(
        jnp.dot(x1, w10_ref[...], preferred_element_type=jnp.float32) + b10_ref[...], 0.0)
    c0 = jnp.maximum(
        jnp.dot(x0, w01_ref[...], preferred_element_type=jnp.float32) + b01_ref[...], 0.0)
    c1 = jnp.maximum(
        jnp.dot(x1, w11_ref[...], preferred_element_type=jnp.float32) + b11_ref[...], 0.0)

    # ---- elementwise chain on one (tile_b, mm_pad) slab only; bf16 on v6e/v7x.
    z_skip_f = a0.astype(elem_dtype) * a1.astype(elem_dtype)
    z1_f = c0.astype(elem_dtype) * c1.astype(elem_dtype) * z_skip_f

    # ---- factor-sum as an accumulation over the inner grid axis (f32 accumulators).
    @pl.when(f == 0)
    def _():
        z0_acc[...] = z_skip_f.astype(jnp.float32)
        z1_acc[...] = z1_f.astype(jnp.float32)

    @pl.when(f != 0)
    def _():
        z0_acc[...] += z_skip_f.astype(jnp.float32)
        z1_acc[...] += z1_f.astype(jnp.float32)

    # ---- concat([z0, z1]) @ Wout == z0 @ Wout_top + z1 @ Wout_bot, on the last slab.
    @pl.when(f == pl.num_programs(1) - 1)
    def _():
        w_dtype = wout0_ref.dtype
        z = (jnp.dot(z0_acc[...].astype(w_dtype), wout0_ref[...],
                     preferred_element_type=jnp.float32)
             + jnp.dot(z1_acc[...].astype(w_dtype), wout1_ref[...],
                       preferred_element_type=jnp.float32)
             + bout_ref[...])
        # activ_output = relu ; dropout_output = 0 -> identity
        out_ref[...] = jnp.maximum(z, 0.0).astype(out_ref.dtype)


def prepare_mfh_params(params, *, d0, d1, mm_dim, factor, output_dim,
                       compute_dtype=jnp.bfloat16, lane_pad=128):
    """One-time weight prep (hoist out of the per-call path).

    Projection-weight columns are permuted from factor-minor (m*factor + f) to
    factor-major (f*mm_pad + m) and zero-padded so the factor-sum becomes an
    accumulation over lane-aligned mm_pad-wide column slabs.
    NOTE: use lane_pad=256 on v6e/v7x for full-width MXU passes (128 is always safe).
    """
    (w00, b00, w10, b10, w01, b01, w11, b11, wout, bout) = params
    f32 = jnp.float32

    mm_pad = _round_up(mm_dim, lane_pad)
    out_pad = _round_up(output_dim, lane_pad)
    d0_pad = _round_up(d0, lane_pad)
    d1_pad = _round_up(d1, lane_pad)

    def prep_proj(w, b, d_in, d_pad):
        w_r = jnp.transpose(w.astype(f32).reshape(d_in, mm_dim, factor), (0, 2, 1))
        w_r = jnp.pad(w_r, ((0, d_pad - d_in), (0, 0), (0, mm_pad - mm_dim)))
        b_r = jnp.transpose(b.astype(f32).reshape(mm_dim, factor), (1, 0))
        b_r = jnp.pad(b_r, ((0, 0), (0, mm_pad - mm_dim)))
        return (w_r.reshape(d_pad, factor * mm_pad).astype(compute_dtype),
                b_r.reshape(1, factor * mm_pad))              # bias stays f32

    w00p, b00p = prep_proj(w00, b00, d0, d0_pad)
    w10p, b10p = prep_proj(w10, b10, d1, d1_pad)
    w01p, b01p = prep_proj(w01, b01, d0, d0_pad)
    w11p, b11p = prep_proj(w11, b11, d1, d1_pad)

    def prep_out(w_half):
        wp = jnp.zeros((mm_pad, out_pad), f32).at[:mm_dim, :output_dim].set(
            w_half.astype(f32))
        return wp.astype(compute_dtype)

    wout0p = prep_out(wout[:mm_dim, :])      # acts on z0
    wout1p = prep_out(wout[mm_dim:, :])      # acts on z1
    boutp = jnp.zeros((1, out_pad), f32).at[0, :output_dim].set(bout.astype(f32))

    tensors = (w00p, b00p, w10p, b10p, w01p, b01p, w11p, b11p, wout0p, wout1p, boutp)
    meta = dict(mm_dim=mm_dim, factor=factor, output_dim=output_dim,
                d0=d0, d1=d1, mm_pad=mm_pad, out_pad=out_pad,
                d0_pad=d0_pad, d1_pad=d1_pad, compute_dtype=compute_dtype)
    return tensors, meta


def mfh_forward_prepared(x0, x1, prepared, *, max_tile_b=256, elem_dtype=None,
                         interpret=False):
    tensors, meta = prepared
    (w00p, b00p, w10p, b10p, w01p, b01p, w11p, b11p, wout0p, wout1p, boutp) = tensors
    mm_pad, out_pad = meta["mm_pad"], meta["out_pad"]
    d0_pad, d1_pad = meta["d0_pad"], meta["d1_pad"]
    factor = meta["factor"]
    compute_dtype = meta["compute_dtype"]

    if elem_dtype is None:
        # bf16 VPU exists on v6e/v7x; pass elem_dtype=jnp.float32 explicitly on v5e.
        elem_dtype = (compute_dtype
                      if jnp.dtype(compute_dtype) == jnp.dtype(jnp.bfloat16)
                      else jnp.float32)

    B, d0 = x0.shape
    B1, d1 = x1.shape
    assert B == B1 and d0 == meta["d0"] and d1 == meta["d1"]

    # ---- balanced batch tiles: minimize padding; >= 2 tiles when the batch is big
    # enough so the "parallel" axis spans both v7x TensorCores.
    n_tiles = _cdiv(B, max_tile_b)
    if B > max_tile_b // 2:
        n_tiles = max(n_tiles, 2)
    tile_b = _round_up(_cdiv(B, n_tiles), 8)
    b_pad = _round_up(B, tile_b)

    # Cast before padding (halves the pad op's bandwidth for bf16).
    x0p = jnp.pad(x0.astype(compute_dtype), ((0, b_pad - B), (0, d0_pad - d0)))
    x1p = jnp.pad(x1.astype(compute_dtype), ((0, b_pad - B), (0, d1_pad - d1)))

    grid = (b_pad // tile_b, factor)

    def batch_spec(cols):
        return pl.BlockSpec((tile_b, cols), lambda i, f: (i, 0))

    def slab_spec(rows):
        # One factor-major column slab (mm_pad lanes) per inner ("arbitrary") step.
        return pl.BlockSpec((rows, mm_pad), lambda i, f: (0, f))

    def invariant_spec(shape):
        # Grid-invariant operand: single buffer (no wasted double-buffer VMEM).
        return pl.BlockSpec(shape, lambda i, f: (0,) * len(shape),
                            pipeline_mode=pl.Buffered(1))

    in_specs = [
        batch_spec(d0_pad), batch_spec(d1_pad),
        slab_spec(d0_pad), slab_spec(1),
        slab_spec(d1_pad), slab_spec(1),
        slab_spec(d0_pad), slab_spec(1),
        slab_spec(d1_pad), slab_spec(1),
        invariant_spec(wout0p.shape), invariant_spec(wout1p.shape),
        invariant_spec(boutp.shape),
    ]

    # ---- resident-VMEM estimate: double-buffered per-step operands + single-buffered
    # invariants + f32 accumulators + live intermediates (one slab's worth only).
    cd = jnp.dtype(compute_dtype).itemsize
    ed = jnp.dtype(elem_dtype).itemsize
    per_step = (2 * (d0_pad + d1_pad) * mm_pad * cd       # 4 projection-weight slabs
                + 4 * mm_pad * 4                          # 4 bias slabs (f32)
                + tile_b * (d0_pad + d1_pad) * cd         # x0/x1 tiles
                + tile_b * out_pad * 4)                   # output tile (f32)
    invariant = 2 * mm_pad * out_pad * cd + out_pad * 4   # wout halves + bout
    acc = 2 * tile_b * mm_pad * 4                         # z0/z1 accumulators
    interm = tile_b * mm_pad * (4 * 4 + 2 * ed)           # a0,a1,c0,c1 + z_skip,z1
    vmem_est = 2 * per_step + invariant + acc + interm

    try:
        vmem_cap = pltpu.get_tpu_info().vmem_capacity_bytes
    except Exception:
        vmem_cap = 64 * 1024 * 1024
    # Per-generation cap with compiler headroom instead of a hard 64 MiB clamp.
    vmem_limit = int(min(max(vmem_est, 32 * 1024 * 1024), int(vmem_cap * 0.85)))
    # TODO(synk): if a single mm_pad slab ever exceeds this limit (extreme mm_dim on
    # v7x), split the slab axis further (e.g. 512-lane chunks) instead of clamping.

    kernel = functools.partial(mfh_kernel, elem_dtype=elem_dtype)

    out = pl.pallas_call(
        kernel,
        out_shape=jax.ShapeDtypeStruct((b_pad, out_pad), jnp.float32),
        grid_spec=pltpu.PrefetchScalarGridSpec(
            num_scalar_prefetch=0,
            grid=grid,
            in_specs=in_specs,
            out_specs=batch_spec(out_pad),
            scratch_shapes=[pltpu.VMEM((tile_b, mm_pad), jnp.float32),
                            pltpu.VMEM((tile_b, mm_pad), jnp.float32)],
        ),
        compiler_params=pltpu.CompilerParams(
            dimension_semantics=("parallel", "arbitrary"),
            vmem_limit_bytes=vmem_limit,
        ),
        interpret=interpret,
    )(x0p, x1p,
      w00p, b00p, w10p, b10p, w01p, b01p, w11p, b11p,
      wout0p, wout1p, boutp)

    return out[:B, :meta["output_dim"]]


def mfh_forward(x0, x1, params, *, mm_dim, factor, output_dim,
                compute_dtype=jnp.bfloat16, max_tile_b=256, elem_dtype=None):
    """Convenience wrapper: prep + run.  Hoist prepare_mfh_params() for repeated calls."""
    prepared = prepare_mfh_params(
        params, d0=x0.shape[1], d1=x1.shape[1], mm_dim=mm_dim, factor=factor,
        output_dim=output_dim, compute_dtype=compute_dtype)
    return mfh_forward_prepared(x0, x1, prepared, max_tile_b=max_tile_b,
                                elem_dtype=elem_dtype)


def mfh_reference(x0, x1, params, *, mm_dim, factor):
    """Pure-JAX f32 reference mirroring the PyTorch forward (eval mode)."""
    (w00, b00, w10, b10, w01, b01, w11, b11, wout, bout) = params
    a0 = jax.nn.relu(x0 @ w00 + b00)
    a1 = jax.nn.relu(x1 @ w10 + b10)
    z_skip = a0 * a1
    z0 = z_skip.reshape(z_skip.shape[0], mm_dim, factor).sum(-1)
    c0 = jax.nn.relu(x0 @ w01 + b01)
    c1 = jax.nn.relu(x1 @ w11 + b11)
    z1 = (c0 * c1 * z_skip).reshape(z_skip.shape[0], mm_dim, factor).sum(-1)
    z = jnp.concatenate([z0, z1], axis=-1)
    return jax.nn.relu(z @ wout + bout)


def make_params(key, d0, d1, mm_dim, factor, output_dim):
    """Deterministic init, PyTorch-Linear-style uniform(-1/sqrt(fan_in), +)."""
    mf = mm_dim * factor

    def linear(k, fan_in, fan_out):
        kw, kb = jax.random.split(k)
        bound = 1.0 / jnp.sqrt(fan_in)
        w = jax.random.uniform(kw, (fan_in, fan_out), jnp.float32, -bound, bound)
        b = jax.random.uniform(kb, (fan_out,), jnp.float32, -bound, bound)
        return w, b

    k = jax.random.split(key, 5)
    w00, b00 = linear(k[0], d0, mf)
    w10, b10 = linear(k[1], d1, mf)
    w01, b01 = linear(k[2], d0, mf)
    w11, b11 = linear(k[3], d1, mf)
    wout, bout = linear(k[4], 2 * mm_dim, output_dim)
    return (w00, b00, w10, b10, w01, b01, w11, b11, wout, bout)


if __name__ == "__main__":
    # Small shapes consistent with the module's forward.
    B = 8
    d0, d1 = 16, 24          # input_dims
    mm_dim, factor = 32, 2
    output_dim = 16

    key = jax.random.PRNGKey(0)
    kx0, kx1, kp = jax.random.split(key, 3)
    x0 = jax.random.normal(kx0, (B, d0), jnp.float32)
    x1 = jax.random.normal(kx1, (B, d1), jnp.float32)
    params = make_params(kp, d0, d1, mm_dim, factor, output_dim)

    ref = mfh_reference(x0, x1, params, mm_dim=mm_dim, factor=factor)

    # 1) f32 compute path: tight check of the permuted/padded/slab-accumulated structure.
    prep_f32 = prepare_mfh_params(params, d0=d0, d1=d1, mm_dim=mm_dim, factor=factor,
                                  output_dim=output_dim, compute_dtype=jnp.float32)
    out_f32 = mfh_forward_prepared(x0, x1, prep_f32)
    out_f32 = jax.block_until_ready(out_f32)
    assert out_f32.shape == (B, output_dim)
    assert jnp.allclose(out_f32, ref, atol=1e-5, rtol=1e-5), "f32 mismatch vs reference"

    # 2) bf16 compute path (production config): looser tolerance vs f32 reference.
    prep_bf16 = prepare_mfh_params(params, d0=d0, d1=d1, mm_dim=mm_dim, factor=factor,
                                   output_dim=output_dim, compute_dtype=jnp.bfloat16)
    out_bf16 = mfh_forward_prepared(x0, x1, prep_bf16)
    out_bf16 = jax.block_until_ready(out_bf16)
    assert out_bf16.shape == (B, output_dim)
    assert jnp.allclose(out_bf16, ref, atol=1e-1, rtol=1e-1), "bf16 mismatch vs reference"

    print("KERNEL_OK")
</pallas_src>

<mosaic_0001>
module attributes {stable_mosaic.version = 11 : i64} {
  func.func @mfh_kernel(%arg0: i32, %arg1: i32, %arg2: memref<8x128xf32, #tpu.memory_space<vmem>>, %arg3: memref<8x128xf32, #tpu.memory_space<vmem>>, %arg4: memref<128x128xf32, #tpu.memory_space<vmem>>, %arg5: memref<1x128xf32, #tpu.memory_space<vmem>>, %arg6: memref<128x128xf32, #tpu.memory_space<vmem>>, %arg7: memref<1x128xf32, #tpu.memory_space<vmem>>, %arg8: memref<128x128xf32, #tpu.memory_space<vmem>>, %arg9: memref<1x128xf32, #tpu.memory_space<vmem>>, %arg10: memref<128x128xf32, #tpu.memory_space<vmem>>, %arg11: memref<1x128xf32, #tpu.memory_space<vmem>>, %arg12: memref<128x128xf32, #tpu.memory_space<vmem>>, %arg13: memref<128x128xf32, #tpu.memory_space<vmem>>, %arg14: memref<1x128xf32, #tpu.memory_space<vmem>>, %arg15: memref<8x128xf32, #tpu.memory_space<vmem>>, %arg16: memref<8x128xf32, #tpu.memory_space<vmem>>, %arg17: memref<8x128xf32, #tpu.memory_space<vmem>>) attributes {dimension_semantics = [#tpu.dimension_semantics<parallel>, #tpu.dimension_semantics<arbitrary>], iteration_bounds = array<i64: 1, 2>, scalar_prefetch = 0 : i64, scratch_operands = 2 : i64, tpu.core_type = #tpu.core_type<tc>, window_params = [{transform_indices = @transform_0, window_bounds = array<i64: 8, 128>}, {transform_indices = @transform_1, window_bounds = array<i64: 8, 128>}, {transform_indices = @transform_2, window_bounds = array<i64: 128, 128>}, {transform_indices = @transform_3, window_bounds = array<i64: 1, 128>}, {transform_indices = @transform_4, window_bounds = array<i64: 128, 128>}, {transform_indices = @transform_5, window_bounds = array<i64: 1, 128>}, {transform_indices = @transform_6, window_bounds = array<i64: 128, 128>}, {transform_indices = @transform_7, window_bounds = array<i64: 1, 128>}, {transform_indices = @transform_8, window_bounds = array<i64: 128, 128>}, {transform_indices = @transform_9, window_bounds = array<i64: 1, 128>}, {pipeline_mode = #tpu.pipeline_mode<synchronous>, transform_indices = @transform_10, window_bounds = array<i64: 128, 128>}, {pipeline_mode = #tpu.pipeline_mode<synchronous>, transform_indices = @transform_11, window_bounds = array<i64: 128, 128>}, {pipeline_mode = #tpu.pipeline_mode<synchronous>, transform_indices = @transform_12, window_bounds = array<i64: 1, 128>}, {transform_indices = @transform_13, window_bounds = array<i64: 8, 128>}]} {
    %c0 = arith.constant 0 : index
    %c0_0 = arith.constant 0 : index
    %0 = vector.load %arg2[%c0, %c0_0] : memref<8x128xf32, #tpu.memory_space<vmem>>, vector<8x128xf32>
    %c0_1 = arith.constant 0 : index
    %c0_2 = arith.constant 0 : index
    %1 = vector.load %arg3[%c0_1, %c0_2] : memref<8x128xf32, #tpu.memory_space<vmem>>, vector<8x128xf32>
    %c0_3 = arith.constant 0 : index
    %c0_4 = arith.constant 0 : index
    %2 = vector.load %arg4[%c0_3, %c0_4] : memref<128x128xf32, #tpu.memory_space<vmem>>, vector<128x128xf32>
    %cst = arith.constant dense<0.000000e+00> : vector<8x128xf32>
    %3 = tpu.matmul %0, %2, %cst {dimension_numbers = #tpu.dot_dimension_numbers<[1], [0], [0], [1], [0, 0, 1, 1], [], []>} : vector<8x128xf32>, vector<128x128xf32>, vector<8x128xf32> -> vector<8x128xf32>
    %c0_5 = arith.constant 0 : index
    %c0_6 = arith.constant 0 : index
    %4 = vector.load %arg5[%c0_5, %c0_6] : memref<1x128xf32, #tpu.memory_space<vmem>>, vector<1x128xf32>
    %5 = vector.broadcast %4 : vector<1x128xf32> to vector<8x128xf32>
    %6 = arith.addf %3, %5 : vector<8x128xf32>
    %cst_7 = arith.constant 0.000000e+00 : f32
    %7 = vector.broadcast %cst_7 : f32 to vector<8x128xf32>
    %8 = arith.maximumf %6, %7 : vector<8x128xf32>
    %c0_8 = arith.constant 0 : index
    %c0_9 = arith.constant 0 : index
    %9 = vector.load %arg6[%c0_8, %c0_9] : memref<128x128xf32, #tpu.memory_space<vmem>>, vector<128x128xf32>
    %cst_10 = arith.constant dense<0.000000e+00> : vector<8x128xf32>
    %10 = tpu.matmul %1, %9, %cst_10 {dimension_numbers = #tpu.dot_dimension_numbers<[1], [0], [0], [1], [0, 0, 1, 1], [], []>} : vector<8x128xf32>, vector<128x128xf32>, vector<8x128xf32> -> vector<8x128xf32>
    %c0_11 = arith.constant 0 : index
    %c0_12 = arith.constant 0 : index
    %11 = vector.load %arg7[%c0_11, %c0_12] : memref<1x128xf32, #tpu.memory_space<vmem>>, vector<1x128xf32>
    %12 = vector.broadcast %11 : vector<1x128xf32> to vector<8x128xf32>
    %13 = arith.addf %10, %12 : vector<8x128xf32>
    %cst_13 = arith.constant 0.000000e+00 : f32
    %14 = vector.broadcast %cst_13 : f32 to vector<8x128xf32>
    %15 = arith.maximumf %13, %14 : vector<8x128xf32>
    %c0_14 = arith.constant 0 : index
    %c0_15 = arith.constant 0 : index
    %16 = vector.load %arg8[%c0_14, %c0_15] : memref<128x128xf32, #tpu.memory_space<vmem>>, vector<128x128xf32>
    %cst_16 = arith.constant dense<0.000000e+00> : vector<8x128xf32>
    %17 = tpu.matmul %0, %16, %cst_16 {dimension_numbers = #tpu.dot_dimension_numbers<[1], [0], [0], [1], [0, 0, 1, 1], [], []>} : vector<8x128xf32>, vector<128x128xf32>, vector<8x128xf32> -> vector<8x128xf32>
    %c0_17 = arith.constant 0 : index
    %c0_18 = arith.constant 0 : index
    %18 = vector.load %arg9[%c0_17, %c0_18] : memref<1x128xf32, #tpu.memory_space<vmem>>, vector<1x128xf32>
    %19 = vector.broadcast %18 : vector<1x128xf32> to vector<8x128xf32>
    %20 = arith.addf %17, %19 : vector<8x128xf32>
    %cst_19 = arith.constant 0.000000e+00 : f32
    %21 = vector.broadcast %cst_19 : f32 to vector<8x128xf32>
    %22 = arith.maximumf %20, %21 : vector<8x128xf32>
    %c0_20 = arith.constant 0 : index
    %c0_21 = arith.constant 0 : index
    %23 = vector.load %arg10[%c0_20, %c0_21] : memref<128x128xf32, #tpu.memory_space<vmem>>, vector<128x128xf32>
    %cst_22 = arith.constant dense<0.000000e+00> : vector<8x128xf32>
    %24 = tpu.matmul %1, %23, %cst_22 {dimension_numbers = #tpu.dot_dimension_numbers<[1], [0], [0], [1], [0, 0, 1, 1], [], []>} : vector<8x128xf32>, vector<128x128xf32>, vector<8x128xf32> -> vector<8x128xf32>
    %c0_23 = arith.constant 0 : index
    %c0_24 = arith.constant 0 : index
    %25 = vector.load %arg11[%c0_23, %c0_24] : memref<1x128xf32, #tpu.memory_space<vmem>>, vector<1x128xf32>
    %26 = vector.broadcast %25 : vector<1x128xf32> to vector<8x128xf32>
    %27 = arith.addf %24, %26 : vector<8x128xf32>
    %cst_25 = arith.constant 0.000000e+00 : f32
    %28 = vector.broadcast %cst_25 : f32 to vector<8x128xf32>
    %29 = arith.maximumf %27, %28 : vector<8x128xf32>
    %30 = arith.mulf %8, %15 : vector<8x128xf32>
    %31 = arith.mulf %22, %29 : vector<8x128xf32>
    %32 = arith.mulf %31, %30 : vector<8x128xf32>
    %c0_i32 = arith.constant 0 : i32
    %33 = arith.cmpi eq, %arg1, %c0_i32 : i32
    %34 = arith.extui %33 : i1 to i32
    %c0_i32_26 = arith.constant 0 : i32
    %35 = arith.cmpi ne, %34, %c0_i32_26 : i32
    scf.if %35 {
      %c0_30 = arith.constant 0 : index
      %c0_31 = arith.constant 0 : index
      %42 = vector.load %arg16[%c0_30, %c0_31] : memref<8x128xf32, #tpu.memory_space<vmem>>, vector<8x128xf32>
      tpu.vector_store %arg16[%c0_30, %c0_31], %30 {strides = array<i32>} : memref<8x128xf32, #tpu.memory_space<vmem>>, vector<8x128xf32>,
      %c0_32 = arith.constant 0 : index
      %c0_33 = arith.constant 0 : index
      %43 = vector.load %arg17[%c0_32, %c0_33] : memref<8x128xf32, #tpu.memory_space<vmem>>, vector<8x128xf32>
      tpu.vector_store %arg17[%c0_32, %c0_33], %32 {strides = array<i32>} : memref<8x128xf32, #tpu.memory_space<vmem>>, vector<8x128xf32>,
    } else {
    }
    %c0_i32_27 = arith.constant 0 : i32
    %36 = arith.cmpi ne, %arg1, %c0_i32_27 : i32
    %37 = arith.extui %36 : i1 to i32
    %c0_i32_28 = arith.constant 0 : i32
    %38 = arith.cmpi ne, %37, %c0_i32_28 : i32
    scf.if %38 {
      %c0_30 = arith.constant 0 : index
      %c0_31 = arith.constant 0 : index
      %42 = vector.load %arg16[%c0_30, %c0_31] : memref<8x128xf32, #tpu.memory_space<vmem>>, vector<8x128xf32>
      %43 = arith.addf %42, %30 : vector<8x128xf32>
      %c0_32 = arith.constant 0 : index
      %c0_33 = arith.constant 0 : index
      %44 = vector.load %arg16[%c0_32, %c0_33] : memref<8x128xf32, #tpu.memory_space<vmem>>, vector<8x128xf32>
      tpu.vector_store %arg16[%c0_32, %c0_33], %43 {strides = array<i32>} : memref<8x128xf32, #tpu.memory_space<vmem>>, vector<8x128xf32>,
      %c0_34 = arith.constant 0 : index
      %c0_35 = arith.constant 0 : index
      %45 = vector.load %arg17[%c0_34, %c0_35] : memref<8x128xf32, #tpu.memory_space<vmem>>, vector<8x128xf32>
      %46 = arith.addf %45, %32 : vector<8x128xf32>
      %c0_36 = arith.constant 0 : index
      %c0_37 = arith.constant 0 : index
      %47 = vector.load %arg17[%c0_36, %c0_37] : memref<8x128xf32, #tpu.memory_space<vmem>>, vector<8x128xf32>
      tpu.vector_store %arg17[%c0_36, %c0_37], %46 {strides = array<i32>} : memref<8x128xf32, #tpu.memory_space<vmem>>, vector<8x128xf32>,
    } else {
    }
    %c1_i32 = arith.constant 1 : i32
    %39 = arith.cmpi eq, %arg1, %c1_i32 : i32
    %40 = arith.extui %39 : i1 to i32
    %c0_i32_29 = arith.constant 0 : i32
    %41 = arith.cmpi ne, %40, %c0_i32_29 : i32
    scf.if %41 {
      %c0_30 = arith.constant 0 : index
      %c0_31 = arith.constant 0 : index
      %42 = vector.load %arg16[%c0_30, %c0_31] : memref<8x128xf32, #tpu.memory_space<vmem>>, vector<8x128xf32>
      %c0_32 = arith.constant 0 : index
      %c0_33 = arith.constant 0 : index
      %43 = vector.load %arg12[%c0_32, %c0_33] : memref<128x128xf32, #tpu.memory_space<vmem>>, vector<128x128xf32>
      %cst_34 = arith.constant dense<0.000000e+00> : vector<8x128xf32>
      %44 = tpu.matmul %42, %43, %cst_34 {dimension_numbers = #tpu.dot_dimension_numbers<[1], [0], [0], [1], [0, 0, 1, 1], [], []>} : vector<8x128xf32>, vector<128x128xf32>, vector<8x128xf32> -> vector<8x128xf32>
      %c0_35 = arith.constant 0 : index
      %c0_36 = arith.constant 0 : index
      %45 = vector.load %arg17[%c0_35, %c0_36] : memref<8x128xf32, #tpu.memory_space<vmem>>, vector<8x128xf32>
      %c0_37 = arith.constant 0 : index
      %c0_38 = arith.constant 0 : index
      %46 = vector.load %arg13[%c0_37, %c0_38] : memref<128x128xf32, #tpu.memory_space<vmem>>, vector<128x128xf32>
      %cst_39 = arith.constant dense<0.000000e+00> : vector<8x128xf32>
      %47 = tpu.matmul %45, %46, %cst_39 {dimension_numbers = #tpu.dot_dimension_numbers<[1], [0], [0], [1], [0, 0, 1, 1], [], []>} : vector<8x128xf32>, vector<128x128xf32>, vector<8x128xf32> -> vector<8x128xf32>
      %48 = arith.addf %44, %47 : vector<8x128xf32>
      %c0_40 = arith.constant 0 : index
      %c0_41 = arith.constant 0 : index
      %49 = vector.load %arg14[%c0_40, %c0_41] : memref<1x128xf32, #tpu.memory_space<vmem>>, vector<1x128xf32>
      %50 = vector.broadcast %49 : vector<1x128xf32> to vector<8x128xf32>
      %51 = arith.addf %48, %50 : vector<8x128xf32>
      %cst_42 = arith.constant 0.000000e+00 : f32
      %52 = vector.broadcast %cst_42 : f32 to vector<8x128xf32>
      %53 = arith.maximumf %51, %52 : vector<8x128xf32>
      %c0_43 = arith.constant 0 : index
      %c0_44 = arith.constant 0 : index
      %54 = vector.load %arg15[%c0_43, %c0_44] : memref<8x128xf32, #tpu.memory_space<vmem>>, vector<8x128xf32>
      tpu.vector_store %arg15[%c0_43, %c0_44], %53 {strides = array<i32>} : memref<8x128xf32, #tpu.memory_space<vmem>>, vector<8x128xf32>,
    } else {
    }
    return
  }
  func.func @transform_0(%arg0: i32, %arg1: i32) -> (i32, i32) {
    %c0_i32 = arith.constant 0 : i32
    %c0_i32_0 = arith.constant 0 : i32
    return %arg0, %c0_i32 : i32, i32
  }
  func.func @transform_1(%arg0: i32, %arg1: i32) -> (i32, i32) {
    %c0_i32 = arith.constant 0 : i32
    %c0_i32_0 = arith.constant 0 : i32
    return %arg0, %c0_i32 : i32, i32
  }
  func.func @transform_2(%arg0: i32, %arg1: i32) -> (i32, i32) {
    %c0_i32 = arith.constant 0 : i32
    %c0_i32_0 = arith.constant 0 : i32
    return %c0_i32, %arg1 : i32, i32
  }
  func.func @transform_3(%arg0: i32, %arg1: i32) -> (i32, i32) {
    %c0_i32 = arith.constant 0 : i32
    %c0_i32_0 = arith.constant 0 : i32
    return %c0_i32, %arg1 : i32, i32
  }
  func.func @transform_4(%arg0: i32, %arg1: i32) -> (i32, i32) {
    %c0_i32 = arith.constant 0 : i32
    %c0_i32_0 = arith.constant 0 : i32
    return %c0_i32, %arg1 : i32, i32
  }
  func.func @transform_5(%arg0: i32, %arg1: i32) -> (i32, i32) {
    %c0_i32 = arith.constant 0 : i32
    %c0_i32_0 = arith.constant 0 : i32
    return %c0_i32, %arg1 : i32, i32
  }
  func.func @transform_6(%arg0: i32, %arg1: i32) -> (i32, i32) {
    %c0_i32 = arith.constant 0 : i32
    %c0_i32_0 = arith.constant 0 : i32
    return %c0_i32, %arg1 : i32, i32
  }
  func.func @transform_7(%arg0: i32, %arg1: i32) -> (i32, i32) {
    %c0_i32 = arith.constant 0 : i32
    %c0_i32_0 = arith.constant 0 : i32
    return %c0_i32, %arg1 : i32, i32
  }
  func.func @transform_8(%arg0: i32, %arg1: i32) -> (i32, i32) {
    %c0_i32 = arith.constant 0 : i32
    %c0_i32_0 = arith.constant 0 : i32
    return %c0_i32, %arg1 : i32, i32
  }
  func.func @transform_9(%arg0: i32, %arg1: i32) -> (i32, i32) {
    %c0_i32 = arith.constant 0 : i32
    %c0_i32_0 = arith.constant 0 : i32
    return %c0_i32, %arg1 : i32, i32
  }
  func.func @transform_10(%arg0: i32, %arg1: i32) -> (i32, i32) {
    %c0_i32 = arith.constant 0 : i32
    %c0_i32_0 = arith.constant 0 : i32
    %c0_i32_1 = arith.constant 0 : i32
    return %c0_i32, %c0_i32_0 : i32, i32
  }
  func.func @transform_11(%arg0: i32, %arg1: i32) -> (i32, i32) {
    %c0_i32 = arith.constant 0 : i32
    %c0_i32_0 = arith.constant 0 : i32
    %c0_i32_1 = arith.constant 0 : i32
    return %c0_i32, %c0_i32_0 : i32, i32
  }
  func.func @transform_12(%arg0: i32, %arg1: i32) -> (i32, i32) {
    %c0_i32 = arith.constant 0 : i32
    %c0_i32_0 = arith.constant 0 : i32
    %c0_i32_1 = arith.constant 0 : i32
    return %c0_i32, %c0_i32_0 : i32, i32
  }
  func.func @transform_13(%arg0: i32, %arg1: i32) -> (i32, i32) {
    %c0_i32 = arith.constant 0 : i32
    %c0_i32_0 = arith.constant 0 : i32
    return %arg0, %c0_i32 : i32, i32
  }
}

</mosaic_0001>

<bundles_post_ra>
// kernel: tpu_custom_call.1
= control target key start
LH: loop header
LB: loop body
LE: loop exit
PB: predicated region body
PF: predicated region fallthrough
CT: control target
= control target key end

     0   :  { %s3054_s0 = inlined_call_operand.hbm [shape: f32[8,128], index: 0, kind: input, shape index: {}]   ;;  %s3055_s1 = inlined_call_operand.hbm [shape: f32[8,128], index: 1, kind: input, shape index: {}]   ;;  %s3056_s2 = inlined_call_operand.hbm [shape: f32[128,256], index: 2, kind: input, shape index: {}]   ;;  %s3057_s3 = inlined_call_operand.vmem [shape: f32[1,256], index: 3, kind: input, shape index: {}]   ;;  %s3058_s4 = inlined_call_operand.hbm [shape: f32[128,256], index: 4, kind: input, shape index: {}]   ;;  %s3059_s5 = inlined_call_operand.vmem [shape: f32[1,256], index: 5, kind: input, shape index: {}]   ;;  %s3060_s6 = inlined_call_operand.hbm [shape: f32[128,256], index: 6, kind: input, shape index: {}]   ;;  %s3061_s7 = inlined_call_operand.vmem [shape: f32[1,256], index: 7, kind: input, shape index: {}]   ;;  %s3062_s8 = inlined_call_operand.hbm [shape: f32[128,256], index: 8, kind: input, shape index: {}]   ;;  %s3063_s9 = inlined_call_operand.vmem [shape: f32[1,256], index: 9, kind: input, shape index: {}]   ;;  %s3064_s10 = inlined_call_operand.hbm [shape: f32[128,128], index: 10, kind: input, shape index: {}]   ;;  %s3065_s11 = inlined_call_operand.hbm [shape: f32[128,128], index: 11, kind: input, shape index: {}]   ;;  %s3066_s12 = inlined_call_operand.vmem [shape: f32[1,128], index: 12, kind: input, shape index: {}]   ;;  %s3067_s13 = inlined_call_operand.hbm [shape: f32[8,128], index: 13, kind: output, shape index: {}]  }
   0x1   :  { %3086 = sst [smem:[#allocation28_spill]] %s3054_s0 }
   0x2   :  { %3087 = sst [smem:[#allocation29_spill]] %s3055_s1 }
   0x3   :  { %3088 = sst [smem:[#allocation30_spill]] %s3056_s2 }
   0x4   :  { %3089 = sst [smem:[#allocation31_spill]] %s3057_s3 }
   0x5   :  { %3090 = sst [smem:[#allocation32_spill]] %s3058_s4 }
   0x6   :  { %3091 = sst [smem:[#allocation33_spill]] %s3059_s5 }
   0x7   :  { %3092 = sst [smem:[#allocation34_spill]] %s3060_s6 }
   0x8   :  { %3093 = sst [smem:[#allocation35_spill]] %s3061_s7 }
   0x9   :  { %3094 = sst [smem:[#allocation36_spill]] %s3063_s9 }
   0xa   :  { %3095 = sst [smem:[#allocation37_spill]] %s3066_s12 }
   0xb   :  { %3096 = sst [smem:[#allocation38_spill]] %s3067_s13 }
   0xc   :  { %18 = vsyncpa [#allocation5], 0 }
   0xd   :  { %19 = vsyncpa [#allocation8], 0 }
   0xe   :  { %20 = vsyncpa [#allocation15], 0 }
   0xf   :  { %21 = vsyncpa [#allocation6], 0  ;;  %s2523_s25 = smov 0   ;;  %s2525_s26 = smov 0  }
  0x10   :  { %s2527_s27 = smov 0   ;;  %s2529_s28 = smov 0  }
  0x11   :  { %s2531_s29 = smov 0   ;;  %s2533_s30 = smov 0  }
  0x12 LB: > { %3097 = sst [smem:[#allocation23_spill]] %s2421_s27  ;;  %s2552_s14 = sadd.s32 4294967295, %s2433_s30   ;;  %s2433_s30 = sphi %s2533_s30, %s27_s30   ;;  %s2429_s29 = sphi %s2531_s29, %s3142_s29   ;;  %s2425_s28 = sphi %s2529_s28, %s3141_s28   ;;  %s2421_s27 = sphi %s2527_s27, %s3140_s27   ;;  %s2417_s26 = sphi %s2525_s26, %s3144_s26   ;;  %s2413_s25 = sphi %s2523_s25, %s3143_s25  }
  0x13   : > { %3098 = sst [smem:[#allocation24_spill]] %s2429_s29  ;;  %p105_p0 = scmp.ne.s32.totalorder %s2421_s27, %s2417_s26 }
  0x14   : > { %3099 = sst [smem:[#allocation25_spill]] %s2433_s30  ;;  %p106_p1 = scmp.eq.s32.totalorder %s2433_s30, 0 }
  0x15   : > { %p111_p2 = scmp.ne.s32.totalorder %s2417_s26, %s2413_s25  ;;  %p3069_p3 = scmp.eq.s32.totalorder %s2552_s14, 0 }
  0x16   : > { %p107_p4 = por %p106_p1, %p105_p0  ;;  %p1487_p5 = scmp.ge.s32.totalorder %s2433_s30, 1 }
  0x17   : > { %p2563_p6 = por %p3069_p3, %p111_p2  ;;  %p393_p7 = scmp.lt.s32.totalorder %s2433_s30, 3 }
  0x18   : > { %s2435_s18 = smov [#allocation4]   ;;  %p2036_p10 = scmp.lt.s32.totalorder %s2433_s30, 2 }
  0x19   : > { %s3100_s16 = scalar_select %p2563_p6, 1, 0 }
  0x1a   : > { %p2568_p8 = pnand %p1487_p5, %p393_p7  ;;  %s408_s19 = sshll.u32 %s2435_s18, 4  ;;  %s409_s19 = int_to_ptr.vmem [resolvable:$true] %s408_s19 }
  0x1b   : > { %p2581_p12 = pnand %p2036_p10, %p107_p4  ;;  %s3104_s0 = sld [smem:[#allocation28_spill]] }
  0x1c   : > { %s3101_s17 = scalar_select %p2568_p8, 1, 0 }
  0x1d   : > { %p2006_p9 = pneg %p2568_p8 }
  0x1e   : > { %s3103_s21 = scalar_select %p2581_p12, 1, 0 }
  0x1f   : > { %p2577_p11 = pnand %p2006_p9, %p3069_p3 }
  0x21   : > { %s3102_s20 = scalar_select %p2577_p11, 1, 0 }
  0x22   : > { %s2105_s24 = scalar_lea.hbm %s3104_s0, 128  ;;  %p2593_p0 = pneg %p2577_p11 }
  0x23   : > { %p2106_p13 = scmp.ne.s32.totalorder %s3104_s0, %s2105_s24  ;;  %p2112_p4 = scmp.lt.u32.totalorder %s2105_s24, %s3104_s0 }
  0x24   : > { %s3105_s15 = scalar_select %p2593_p0, 1, 0 }
  0x25   : > { %p2108_p1 = pnand %p2593_p0, %p2106_p13 }
  0x27   : > { %p2109_p2 = pneg %p2108_p1 }
  0x29   : > { %p2114_p5 = pnand %p2112_p4, %p2109_p2 }
  0x2b   : > { %2117 = shalt.err (!%p2114_p5)
}
  0x2c   : > { %s2118_s22 = scalar_lea.vmem %s409_s19, 128  ;;  %p2126_p3 = scmp.lt.s32.totalorder %s409_s19, %s409_s19 }
  0x2d   : > { %p2119_p7 = scmp.ne.s32.totalorder %s409_s19, %s2118_s22  ;;  %p2127_p6 = scmp.lt.s32.totalorder %s2118_s22, %s2118_s22 }
  0x2f   : > { %p2121_p9 = pnand %p2119_p7, %p2593_p0  ;;  %p2128_p8 = por %p2127_p6, %p2126_p3 }
  0x31   : > { %p2122_p10 = pneg %p2121_p9 }
  0x33   : > { %p2129_p12 = pnand %p2128_p8, %p2122_p10 }
  0x35   : > { %2132 = shalt.err (!%p2129_p12)
}
  0x36   : > { %2009 = dma.hbm_to_vmem [thread:$0]  (!%p2577_p11), %s3104_s0, 128, %s409_s19, [#allocation5]  }
  0x37   : > { %s36_s12 = sadd.s32 1, %s2429_s29  ;;  %s461_s13 = sand.u32 1, %s2433_s30  }
  0x38   : > { %p37_p13 = scmp.ge.s32.totalorder %s36_s12, 2  ;;  %s463_s24 = sand.u32 1, %s2421_s27  }
  0x39   : > { %s2613_s18 = sshll.u32 %s2429_s29, 7  ;;  %s2617_s22 = sshll.u32 %s463_s24, 7 }
  0x3a   : > { %s3146_s12 = smov (%p37_p13, %s36_s12), 0  ;;  %s3107_s2 = sld [smem:[#allocation30_spill]] }
  0x3b   : > { %3106 = sst [smem:[#allocation26_spill]] %s3146_s12  ;;  %s95_s19 = ssub.s32 %s2429_s29, %s3146_s12 }
  0x3c   : > { %p96_p3 = scmp.eq.s32.totalorder %s95_s19, 0  ;;  %s465_s0 = scalar_lea.vmem [#allocation9], %s2617_s22 }
  0x3d   : > { %s471_s30 = sshll.u32 %s465_s0, 4  ;;  %s3108_s7 = sadd.s32 1, %s2421_s27  ;;  %s2628_s30 = int_to_ptr.vmem [resolvable:$true] %s471_s30 }
  0x3e   : > { %s2633_s5 = scalar_select %p96_p3, %s2421_s27, %s3108_s7  }
  0x3f   : > { %s2635_s24 = scalar_lea.sflag [#allocation5], %s461_s13  ;;  %p3110_p8 = scmp.ne.s32.totalorder %s3103_s21, 0 }
  0x40   : > { %s2623_s9 = scalar_lea.hbm %s3107_s2, %s2613_s18  ;;  %3109 = sst [smem:[#allocation27_spill]] %s2633_s5 }
  0x41   : > { %s2133_s3 = scalar_lea.hbm %s2623_s9, 2048  ;;  %p2641_p12 = pneg %p3110_p8 }
  0x42   : > { %p2134_p6 = scmp.ne.s32.totalorder %s2623_s9, %s2133_s3  ;;  %s2138_s19 = scalar_lea.hbm %s3107_s2, 4096 }
  0x43   : > { %s3111_s23 = scalar_select %p2641_p12, 1, 0 }
  0x44   : > { %p2136_p1 = pnand %p2641_p12, %p2134_p6  ;;  %p2139_p4 = scmp.lt.u32.totalorder %s2623_s9, %s3107_s2 }
  0x45   : > { %p2140_p5 = scmp.lt.u32.totalorder %s2138_s19, %s2133_s3  ;;  %p2142_p9 = scmp.lt.u32.totalorder %s2133_s3, %s2623_s9 }
  0x46   : > { %p2137_p2 = pneg %p2136_p1 }
  0x47   : > { %p2141_p7 = por %p2140_p5, %p2139_p4 }
  0x49   : > { %p2143_p10 = por %p2142_p9, %p2141_p7 }
  0x4b   : > { %p2144_p13 = pnand %p2143_p10, %p2137_p2 }
  0x4d   : > { %2147 = shalt.err (!%p2144_p13)
}
  0x4e   : > { %s2148_s13 = scalar_lea.vmem %s2628_s30, 2048  ;;  %s2436_s25 = smov [#allocation9]  }
  0x4f   : > { %p2149_p3 = scmp.ne.s32.totalorder %s2628_s30, %s2148_s13  ;;  %s2153_s0 = sshll.u32 %s2436_s25, 4  ;;  %s2154_s0 = int_to_ptr.vmem [resolvable:$false] %s2153_s0 }
  0x50   : > { %s2155_s12 = scalar_lea.vmem %s2154_s0, 4096  ;;  %p2156_p11 = scmp.lt.s32.totalorder %s2628_s30, %s2154_s0 }
  0x51   : > { %p2151_p6 = pnand %p2149_p3, %p2641_p12  ;;  %p2157_p0 = scmp.lt.s32.totalorder %s2155_s12, %s2148_s13 }
  0x53   : > { %p2152_p1 = pneg %p2151_p6  ;;  %p2158_p4 = por %p2157_p0, %p2156_p11 }
  0x55   : > { %p2159_p5 = pnand %p2158_p4, %p2152_p1 }
  0x57   : > { %2162 = shalt.err (!%p2159_p5)
}
  0x58   : > { %s3081_s3 = smov 256   ;;  %s2438_s19 = smov 128  }
  0x59   : > { %s2439_s7 = smov 8   ;;  %s3112_s4 = sld [smem:[#allocation32_spill]] }
  0x5a   : > { %2022 = dma.hbm_to_vmem [thread:$0]  (!%p3110_p8), %s2623_s9, 2048, %s2628_s30, %s2635_s24, %s3081_s3, %s2438_s19, %s2439_s7  }
  0x5b   : > { %s491_s12 = scalar_lea.vmem [#allocation10], %s2617_s22  ;;  %s2440_s29 = smov [#allocation7]  }
  0x5c   : > { %s497_s2 = sshll.u32 %s491_s12, 4  ;;  %s2677_s5 = sshll.u32 %s2440_s29, 4  ;;  %s2675_s2 = int_to_ptr.vmem [resolvable:$true] %s497_s2  ;;  %s422_s5 = int_to_ptr.vmem [resolvable:$true] %s2677_s5 }
  0x5f   : > { %s2672_s0 = scalar_lea.hbm %s3112_s4, %s2613_s18  ;;  %s2168_s25 = scalar_lea.hbm %s3112_s4, 4096 }
  0x60   : > { %s2163_s27 = scalar_lea.hbm %s2672_s0, 2048  ;;  %p2169_p7 = scmp.lt.u32.totalorder %s2672_s0, %s3112_s4 }
  0x61   : > { %p2164_p11 = scmp.ne.s32.totalorder %s2672_s0, %s2163_s27  ;;  %p2170_p9 = scmp.lt.u32.totalorder %s2168_s25, %s2163_s27 }
  0x62   : > { %p2172_p13 = scmp.lt.u32.totalorder %s2163_s27, %s2672_s0 }
  0x63   : > { %p2166_p0 = pnand %p2164_p11, %p2641_p12  ;;  %p2171_p10 = por %p2170_p9, %p2169_p7 }
  0x65   : > { %p2167_p2 = pneg %p2166_p0  ;;  %p2173_p3 = por %p2172_p13, %p2171_p10 }
  0x67   : > { %p2174_p6 = pnand %p2173_p3, %p2167_p2 }
  0x69   : > { %2177 = shalt.err (!%p2174_p6)
}
  0x6a   : > { %s2178_s29 = scalar_lea.vmem %s2675_s2, 2048  ;;  %s2441_s12 = smov [#allocation10]  }
  0x6b   : > { %p2179_p1 = scmp.ne.s32.totalorder %s2675_s2, %s2178_s29  ;;  %s2183_s9 = sshll.u32 %s2441_s12, 4  ;;  %s2184_s9 = int_to_ptr.vmem [resolvable:$false] %s2183_s9 }
  0x6c   : > { %s2185_s3 = scalar_lea.vmem %s2184_s9, 4096  ;;  %p2186_p11 = scmp.lt.s32.totalorder %s2675_s2, %s2184_s9 }
  0x6d   : > { %p2181_p4 = pnand %p2179_p1, %p2641_p12  ;;  %p2187_p0 = scmp.lt.s32.totalorder %s2185_s3, %s2178_s29 }
  0x6f   : > { %p2182_p5 = pneg %p2181_p4  ;;  %p2188_p7 = por %p2187_p0, %p2186_p11 }
  0x71   : > { %p2189_p9 = pnand %p2188_p7, %p2182_p5 }
  0x73   : > { %2192 = shalt.err (!%p2189_p9)
}
  0x74   : > { %s3113_s27 = smov 256   ;;  %s3114_s1 = sld [smem:[#allocation29_spill]] }
  0x75   : > { %2025 = dma.hbm_to_vmem [thread:$0]  (!%p3110_p8), %s2672_s0, 2048, %s2675_s2, %s2635_s24, %s3113_s27, %s2438_s19, %s2439_s7  }
  0x76   : > { %p3115_p10 = scmp.ne.s32.totalorder %s3105_s15, 0 }
  0x7a   : > { %s2193_s13 = scalar_lea.hbm %s3114_s1, 128 }
  0x7b   : > { %p2194_p2 = scmp.ne.s32.totalorder %s3114_s1, %s2193_s13  ;;  %p2200_p6 = scmp.lt.u32.totalorder %s2193_s13, %s3114_s1 }
  0x7d   : > { %p2196_p13 = pnand %p2194_p2, %p3115_p10 }
  0x7f   : > { %p2197_p3 = pneg %p2196_p13 }
  0x81   : > { %p2202_p1 = pnand %p2200_p6, %p2197_p3 }
  0x83   : > { %2205 = shalt.err (!%p2202_p1)
}
  0x84   : > { %s2206_s4 = scalar_lea.vmem %s422_s5, 128  ;;  %p2214_p0 = scmp.lt.s32.totalorder %s422_s5, %s422_s5 }
  0x85   : > { %p2207_p4 = scmp.ne.s32.totalorder %s422_s5, %s2206_s4  ;;  %p2215_p7 = scmp.lt.s32.totalorder %s2206_s4, %s2206_s4 }
  0x87   : > { %p2209_p5 = pnand %p2207_p4, %p3115_p10  ;;  %p2216_p9 = por %p2215_p7, %p2214_p0 }
  0x89   : > { %p2210_p11 = pneg %p2209_p5 }
  0x8b   : > { %p2217_p8 = pnand %p2216_p9, %p2210_p11 }
  0x8d   : > { %2220 = shalt.err (!%p2217_p8)
}
  0x8e   : > { %p3116_p2 = scmp.ne.s32.totalorder %s3102_s20, 0  ;;  %s3117_s6 = sld [smem:[#allocation34_spill]] }
  0x8f   : > { %s517_s4 = scalar_lea.vmem [#allocation11], %s2617_s22 }
  0x90   : > { %2012 = dma.hbm_to_vmem [thread:$0]  (!%p3116_p2), %s3114_s1, 128, %s422_s5, [#allocation8]  }
  0x91   : > { %s523_s29 = sshll.u32 %s517_s4, 4  ;;  %s2730_s29 = int_to_ptr.vmem [resolvable:$true] %s523_s29 }
  0x94   : > { %s2727_s13 = scalar_lea.hbm %s3117_s6, %s2613_s18  ;;  %s2226_s3 = scalar_lea.hbm %s3117_s6, 4096 }
  0x95   : > { %s2221_s12 = scalar_lea.hbm %s2727_s13, 2048  ;;  %p2227_p6 = scmp.lt.u32.totalorder %s2727_s13, %s3117_s6 }
  0x96   : > { %p2222_p8 = scmp.ne.s32.totalorder %s2727_s13, %s2221_s12  ;;  %p2228_p1 = scmp.lt.u32.totalorder %s2226_s3, %s2221_s12 }
  0x97   : > { %p2230_p5 = scmp.lt.u32.totalorder %s2221_s12, %s2727_s13 }
  0x98   : > { %p2224_p13 = pnand %p2222_p8, %p2641_p12  ;;  %p2229_p4 = por %p2228_p1, %p2227_p6 }
  0x9a   : > { %p2225_p3 = pneg %p2224_p13  ;;  %p2231_p11 = por %p2230_p5, %p2229_p4 }
  0x9c   : > { %p2232_p0 = pnand %p2231_p11, %p2225_p3 }
  0x9e   : > { %2235 = shalt.err (!%p2232_p0)
}
  0x9f   : > { %s2236_s30 = scalar_lea.vmem %s2730_s29, 2048  ;;  %s2442_s25 = smov [#allocation11]  }
  0xa0   : > { %p2237_p7 = scmp.ne.s32.totalorder %s2730_s29, %s2236_s30  ;;  %s2241_s4 = sshll.u32 %s2442_s25, 4  ;;  %s2242_s4 = int_to_ptr.vmem [resolvable:$false] %s2241_s4 }
  0xa1   : > { %s2243_s9 = scalar_lea.vmem %s2242_s4, 4096  ;;  %p2244_p13 = scmp.lt.s32.totalorder %s2730_s29, %s2242_s4 }
  0xa2   : > { %p2239_p9 = pnand %p2237_p7, %p2641_p12  ;;  %p2245_p2 = scmp.lt.s32.totalorder %s2243_s9, %s2236_s30 }
  0xa4   : > { %p2240_p8 = pneg %p2239_p9  ;;  %p2246_p6 = por %p2245_p2, %p2244_p13 }
  0xa6   : > { %p2247_p1 = pnand %p2246_p6, %p2240_p8 }
  0xa8   : > { %2250 = shalt.err (!%p2247_p1)
}
  0xa9   : > { %p3118_p3 = scmp.ne.s32.totalorder %s3103_s21, 0  ;;  %s2443_s12 = smov [#allocation13]  }
  0xaa   : > { %s431_s5 = sshll.u32 %s2443_s12, 4  ;;  %s2444_s3 = smov [#allocation14]   ;;  %s432_s5 = int_to_ptr.vmem [resolvable:$true] %s431_s5 }
  0xab   : > { %2028 = dma.hbm_to_vmem [thread:$0]  (!%p3118_p3), %s2727_s13, 2048, %s2730_s29, %s2635_s24, %s3113_s27, %s2438_s19, %s2439_s7  }
  0xac   : > { %s444_s2 = sshll.u32 %s2444_s3, 4  ;;  %s2251_s25 = scalar_lea.hbm %s3064_s10, 2048  ;;  %s445_s2 = int_to_ptr.vmem [resolvable:$true] %s444_s2 }
  0xad   : > { %p2252_p2 = scmp.ne.s32.totalorder %s3064_s10, %s2251_s25  ;;  %p2258_p11 = scmp.lt.u32.totalorder %s2251_s25, %s3064_s10 }
  0xaf   : > { %p2254_p4 = pnand %p2252_p2, %p3115_p10 }
  0xb1   : > { %p2255_p5 = pneg %p2254_p4 }
  0xb3   : > { %p2260_p0 = pnand %p2258_p11, %p2255_p5 }
  0xb5   : > { %2263 = shalt.err (!%p2260_p0)
}
  0xb6   : > { %s2264_s13 = scalar_lea.vmem %s432_s5, 2048  ;;  %p2272_p13 = scmp.lt.s32.totalorder %s432_s5, %s432_s5 }
  0xb7   : > { %p2265_p7 = scmp.ne.s32.totalorder %s432_s5, %s2264_s13  ;;  %p2273_p6 = scmp.lt.s32.totalorder %s2264_s13, %s2264_s13 }
  0xb9   : > { %p2267_p9 = pnand %p2265_p7, %p3115_p10  ;;  %p2274_p1 = por %p2273_p6, %p2272_p13 }
  0xbb   : > { %p2268_p8 = pneg %p2267_p9 }
  0xbd   : > { %p2275_p3 = pnand %p2274_p1, %p2268_p8 }
  0xbf   : > { %2278 = shalt.err (!%p2275_p3)
}
  0xc0   : > { %p3119_p2 = scmp.ne.s32.totalorder %s3102_s20, 0  ;;  %s2279_s3 = scalar_lea.hbm %s3065_s11, 2048 }
  0xc1   : > { %p2280_p4 = scmp.ne.s32.totalorder %s3065_s11, %s2279_s3  ;;  %p2286_p11 = scmp.lt.u32.totalorder %s2279_s3, %s3065_s11 }
  0xc2   : > { %2015 = dma.hbm_to_vmem [thread:$0]  (!%p3119_p2), %s3064_s10, 2048, %s432_s5, [#allocation8], %s2438_s19, %s2438_s19, %s2439_s7  }
  0xc3   : > { %p2282_p3 = pnand %p2280_p4, %p3115_p10 }
  0xc5   : > { %p2283_p5 = pneg %p2282_p3 }
  0xc7   : > { %p2288_p0 = pnand %p2286_p11, %p2283_p5 }
  0xc9   : > { %2291 = shalt.err (!%p2288_p0)
}
  0xca   : > { %s2292_s9 = scalar_lea.vmem %s445_s2, 2048  ;;  %p2300_p13 = scmp.lt.s32.totalorder %s445_s2, %s445_s2 }
  0xcb   : > { %p2293_p7 = scmp.ne.s32.totalorder %s445_s2, %s2292_s9  ;;  %p2301_p6 = scmp.lt.s32.totalorder %s2292_s9, %s2292_s9 }
  0xcd   : > { %p2295_p9 = pnand %p2293_p7, %p3115_p10  ;;  %p2302_p1 = por %p2301_p6, %p2300_p13 }
  0xcf   : > { %p2296_p8 = pneg %p2295_p9 }
  0xd1   : > { %p2303_p12 = pnand %p2302_p1, %p2296_p8 }
  0xd3   : > { %2306 = shalt.err (!%p2303_p12)
}
  0xd4   : > { %2018 = dma.hbm_to_vmem [thread:$0]  (!%p3119_p2), %s3065_s11, 2048, %s445_s2, [#allocation15], %s2438_s19, %s2438_s19, %s2439_s7  }
  0xd5   : > { %s2803_s6 = scalar_lea.hbm %s3062_s8, %s2613_s18  ;;  %s543_s20 = scalar_lea.vmem [#allocation12], %s2617_s22 }
  0xd6   : > { %s549_s29 = sshll.u32 %s543_s20, 4  ;;  %s2307_s12 = scalar_lea.hbm %s2803_s6, 2048  ;;  %s2806_s29 = int_to_ptr.vmem [resolvable:$true] %s549_s29 }
  0xd7   : > { %p2308_p12 = scmp.ne.s32.totalorder %s2803_s6, %s2307_s12  ;;  %p3120_p10 = scmp.ne.s32.totalorder %s3111_s23, 0 }
  0xd8   : > { %s2312_s0 = scalar_lea.hbm %s3062_s8, 4096  ;;  %p2313_p2 = scmp.lt.u32.totalorder %s2803_s6, %s3062_s8 }
  0xd9   : > { %p2310_p4 = pnand %p2308_p12, %p3120_p10  ;;  %p2314_p5 = scmp.lt.u32.totalorder %s2312_s0, %s2307_s12 }
  0xda   : > { %p2316_p0 = scmp.lt.u32.totalorder %s2307_s12, %s2803_s6 }
  0xdb   : > { %p2311_p3 = pneg %p2310_p4  ;;  %p2315_p11 = por %p2314_p5, %p2313_p2 }
  0xdd   : > { %p2317_p7 = por %p2316_p0, %p2315_p11 }
  0xdf   : > { %p2318_p9 = pnand %p2317_p7, %p2311_p3 }
  0xe1   : > { %2321 = shalt.err (!%p2318_p9)
}
  0xe2   : > { %s2322_s22 = scalar_lea.vmem %s2806_s29, 2048  ;;  %s2445_s25 = smov [#allocation12]  }
  0xe3   : > { %p2323_p8 = scmp.ne.s32.totalorder %s2806_s29, %s2322_s22  ;;  %s2327_s4 = sshll.u32 %s2445_s25, 4  ;;  %s2328_s4 = int_to_ptr.vmem [resolvable:$false] %s2327_s4 }
  0xe4   : > { %s2329_s9 = scalar_lea.vmem %s2328_s4, 4096  ;;  %p2330_p1 = scmp.lt.s32.totalorder %s2806_s29, %s2328_s4 }
  0xe5   : > { %p2325_p13 = pnand %p2323_p8, %p3120_p10  ;;  %p2331_p12 = scmp.lt.s32.totalorder %s2329_s9, %s2322_s22 }
  0xe7   : > { %p2326_p6 = pneg %p2325_p13  ;;  %p2332_p4 = por %p2331_p12, %p2330_p1 }
  0xe9   : > { %p2333_p2 = pnand %p2332_p4, %p2326_p6 }
  0xeb   : > { %2336 = shalt.err (!%p2333_p2)
}
  0xec   : > { %p3121_p3 = scmp.ne.s32.totalorder %s3103_s21, 0  ;;  %p3122_p10 = scmp.ne.s32.totalorder %s3101_s17, 0 }
  0xed   : > { %p3123_p5 = scmp.eq.s32.totalorder (!%p3122_p10), %s2552_s14, 0 }
  0xee   : > { %2031 = dma.hbm_to_vmem [thread:$0]  (!%p3121_p3), %s2803_s6, 2048, %s2806_s29, %s2635_s24, %s3113_s27, %s2438_s19, %s2439_s7  }
  0xef   : > { %567 = sbr.rel (%p3122_p10) target bundleno = 847 (0x34f), region = 72 }
  0xf6   : > { %2388 = dma.done.wait (%p3123_p5), [#allocation5], 128   ;;  %p3124_p11 = pmov %p3123_p5 }
  0xf7   : > { %p3125_p0 = pmov %p3123_p5 }
  0xf8   : > { %2390 = vsyncadd (%p3124_p11), [#allocation5], 4294967168 }
  0xf9   : > { %2392 = dma.done.wait (%p3125_p0), [#allocation8], 128   ;;  %p3126_p7 = pmov %p3125_p0 }
  0xfa   : > { %s577_s21 = sand.u32 1, %s2552_s14   ;;  %s579_s24 = sand.u32 1, %s2417_s26  }
  0xfb   : > { %2394 = vsyncadd (%p3126_p7), [#allocation8], 4294967168  ;;  %s1504_s23 = sshll.u32 %s579_s24, 7  ;;  %s578_s17 = scalar_lea.sflag [#allocation5], %s577_s21 }
  0xfc   : > { %s2845_s19 = scalar_lea.vmem [#allocation9], %s1504_s23  ;;  %p3127_p9 = scmp.ne.s32.totalorder %s3100_s16, 0 }
  0xfe   : > { %2396 = dma.done.wait (%p3127_p9), %s578_s17, 8192  }
  0xff   : > { %2398 = vsyncadd (%p3127_p9), %s578_s17, 4294959104  ;;  %s2851_s7 = scalar_lea.vmem [#allocation10], %s1504_s23  ;;  %s2853_s27 = scalar_lea.vmem [#allocation11], %s1504_s23 }
 0x100   : > { %s2855_s5 = scalar_lea.vmem [#allocation12], %s1504_s23  ;;  %p3128_p8 = pmov %p3125_p0 }
 0x101   : > { %p3129_p13 = pmov %p3125_p0 }
 0x102   : > { %2400 = dma.done.wait (%p3128_p8), [#allocation8], 2048  }
 0x103   : > { %2402 = vsyncadd (%p3129_p13), [#allocation8], 4294965248  ;;  %p3130_p6 = pmov %p3125_p0 }
 0x104   : > { %p3131_p1 = pmov %p3125_p0 }
 0x105   : > { %2404 = dma.done.wait (%p3130_p6), [#allocation15], 2048  }
 0x106   : > { %2406 = vsyncadd (%p3131_p1), [#allocation15], 4294965248  ;;  %v2446_v0 = vmov 0.0|0.0   ;;  %vm2447_vm0 = vmmov 0   ;;  %v2448_v1 = vmov 0.0   ;;  %v695_v2 = vld [vmem:[%s2845_s19] sm:$0xff] }
 0x107   : > { %1834 = vmatprep.subr.bf16.mxu0 %v2446_v0  ;;  %1858 = vmatprep.subr.bf16.mxu1 %v2446_v0  ;;  %v696_v3 = vld [vmem:[%s2845_s19 + $0x8] sm:$0xff]  ;;  %v789_v4 = vld [vmem:[%s2851_s7] sm:$0xff]  ;;  %v697_v7 = vld [vmem:[%s2845_s19 + $0x10] sm:$0xff]  ;;  %p681_p12 = scmp.lt.s32.totalorder %s2425_s28, 1  ;;  %s3132_s1 = sld [smem:[#allocation31_spill]] }
 0x108   : > { %1656 = vmatprep.mubr.msk.f32.mxu0 %vm2447_vm0, %v2448_v1  ;;  %1691 = vmatprep.mubr.msk.f32.mxu1 %vm2447_vm0, %v2448_v1  ;;  %v1835_v5 = vpack.c.bf16 %v696_v3, %v695_v2  ;;  %v790_v6 = vld [vmem:[%s2851_s7 + $0x8] sm:$0xff]  ;;  %v698_v8 = vld [vmem:[%s2845_s19 + $0x18] sm:$0xff]  ;;  %v791_v10 = vld [vmem:[%s2851_s7 + $0x10] sm:$0xff]  ;;  %s3133_s12 = sld [smem:[#allocation33_spill]]  ;;  %s3134_s30 = sld [smem:[#allocation35_spill]] }
 0x109   : > { %v1859_v9 = vpack.c.bf16 %v790_v6, %v789_v4  ;;  %v792_v11 = vld [vmem:[%s2851_s7 + $0x18] sm:$0xff]  ;;  %v1838_v12 = vpack.c.bf16 %v698_v8, %v697_v7  ;;  %v699_v14 = vld [vmem:[%s2845_s19 + $0x20] sm:$0xff]  ;;  %v700_v15 = vld [vmem:[%s2845_s19 + $0x28] sm:$0xff]  ;;  %s682_s16 = scalar_select %p681_p12, %s2425_s28, 1 }
 0x10a   : > { %1836 = vmatpush3.bf16.msra.mxu0 %v1835_v5  ;;  %v1862_v13 = vpack.c.bf16 %v792_v11, %v791_v10  ;;  %v793_v16 = vld [vmem:[%s2851_s7 + $0x20] sm:$0xff]  ;;  %v794_v17 = vld [vmem:[%s2851_s7 + $0x28] sm:$0xff]  ;;  %v1841_v18 = vpack.c.bf16 %v700_v15, %v699_v14  ;;  %v701_v20 = vld [vmem:[%s2845_s19 + $0x30] sm:$0xff]  ;;  %s3135_s4 = sld [smem:[#allocation36_spill]]  ;;  %p1514_p4 = scmp.ne.s32.totalorder %s2425_s28, 0 }
 0x10b   : > { %1860 = vmatpush3.bf16.msra.mxu1 %v1859_v9  ;;  %1837 = vmatprep.subr.bf16.mxu0 %v2446_v0  ;;  %v1865_v19 = vpack.c.bf16 %v794_v17, %v793_v16  ;;  %v702_v21 = vld [vmem:[%s2845_s19 + $0x38] sm:$0xff]  ;;  %v795_v22 = vld [vmem:[%s2851_s7 + $0x30] sm:$0xff]  ;;  %v703_v26 = vld [vmem:[%s2845_s19 + $0x40] sm:$0xff] }
 0x10c   : > { %1861 = vmatprep.subr.bf16.mxu1 %v2446_v0  ;;  %v796_v23 = vld [vmem:[%s2851_s7 + $0x38] sm:$0xff]  ;;  %v1844_v24 = vpack.c.bf16 %v702_v21, %v701_v20  ;;  %v704_v27 = vld [vmem:[%s2845_s19 + $0x48] sm:$0xff]  ;;  %v797_v28 = vld [vmem:[%s2851_s7 + $0x40] sm:$0xff] }
 0x10d   : > { %v1868_v25 = vpack.c.bf16 %v796_v23, %v795_v22  ;;  %v798_v29 = vld [vmem:[%s2851_s7 + $0x48] sm:$0xff]  ;;  %v1847_v30 = vpack.c.bf16 %v704_v27, %v703_v26  ;;  %v705_v32 = vld [vmem:[%s2845_s19 + $0x50] sm:$0xff]  ;;  %v706_v33 = vld [vmem:[%s2845_s19 + $0x58] sm:$0xff]  ;;  %s683_s6 = scalar_lea.vmem %s3132_s1, %s682_s16 }
 0x10e   : > { %1839 = vmatpush3.bf16.msra.mxu0 %v1838_v12  ;;  %v1871_v31 = vpack.c.bf16 %v798_v29, %v797_v28  ;;  %v799_v34 = vld [vmem:[%s2851_s7 + $0x50] sm:$0xff]  ;;  %v800_v35 = vld [vmem:[%s2851_s7 + $0x58] sm:$0xff]  ;;  %v1850_v36 = vpack.c.bf16 %v706_v33, %v705_v32  ;;  %v707_v38 = vld [vmem:[%s2845_s19 + $0x60] sm:$0xff]  ;;  %s686_s3 = scalar_lea.vmem %s3133_s12, %s682_s16  ;;  %s689_s18 = scalar_lea.vmem %s3134_s30, %s682_s16 }
 0x10f   : > { %1863 = vmatpush3.bf16.msra.mxu1 %v1862_v13  ;;  %1840 = vmatprep.subr.bf16.mxu0 %v2446_v0  ;;  %v1874_v37 = vpack.c.bf16 %v800_v35, %v799_v34  ;;  %v708_v39 = vld [vmem:[%s2845_s19 + $0x68] sm:$0xff]  ;;  %v801_v40 = vld [vmem:[%s2851_s7 + $0x60] sm:$0xff]  ;;  %v709_v44 = vld [vmem:[%s2845_s19 + $0x70] sm:$0xff] }
 0x110   : > { %1864 = vmatprep.subr.bf16.mxu1 %v2446_v0  ;;  %v802_v41 = vld [vmem:[%s2851_s7 + $0x68] sm:$0xff]  ;;  %v1853_v42 = vpack.c.bf16 %v708_v39, %v707_v38  ;;  %v710_v45 = vld [vmem:[%s2845_s19 + $0x78] sm:$0xff]  ;;  %v803_v46 = vld [vmem:[%s2851_s7 + $0x70] sm:$0xff]  ;;  %s692_s9 = scalar_lea.vmem %s3135_s4, %s682_s16 }
 0x111   : > { %v1877_v43 = vpack.c.bf16 %v802_v41, %v801_v40  ;;  %v804_v47 = vld [vmem:[%s2851_s7 + $0x78] sm:$0xff]  ;;  %v1856_v48 = vpack.c.bf16 %v710_v45, %v709_v44  ;;  %v883_v50 = vld [vmem:[%s2853_s27] sm:$0xff]  ;;  %v884_v51 = vld [vmem:[%s2853_s27 + $0x8] sm:$0xff] }
 0x112   : > { %1842 = vmatpush3.bf16.msra.mxu0 %v1841_v18  ;;  %v1880_v49 = vpack.c.bf16 %v804_v47, %v803_v46  ;;  %v977_v52 = vld [vmem:[%s2855_s5] sm:$0xff]  ;;  %v978_v53 = vld [vmem:[%s2855_s5 + $0x8] sm:$0xff]  ;;  %v2921_v54 = vld [vmem:[#allocation4] sm:$0xff]  ;;  %v1883_v55 = vpack.c.bf16 %v884_v51, %v883_v50 }
 0x113   : > { %1866 = vmatpush3.bf16.msra.mxu1 %v1865_v19  ;;  %1843 = vmatprep.subr.bf16.mxu0 %v2446_v0  ;;  %v2923_v56 = vld [vmem:[#allocation7] sm:$0xff]  ;;  %v1907_v57 = vpack.c.bf16 %v978_v53, %v977_v52  ;;  %v885_v58 = vld [vmem:[%s2853_s27 + $0x10] sm:$0xff]  ;;  %v887_v2 = vld [vmem:[%s2853_s27 + $0x20] sm:$0xff] }
 0x114   : > { %1867 = vmatprep.subr.bf16.mxu1 %v2446_v0  ;;  %v886_v59 = vld [vmem:[%s2853_s27 + $0x18] sm:$0xff]  ;;  %v979_v60 = vld [vmem:[%s2855_s5 + $0x10] sm:$0xff]  ;;  %v888_v3 = vld [vmem:[%s2853_s27 + $0x28] sm:$0xff] }
 0x115   : > { %v980_v61 = vld [vmem:[%s2855_s5 + $0x18] sm:$0xff]  ;;  %v1886_v62 = vpack.c.bf16 %v886_v59, %v885_v58  ;;  %v981_v4 = vld [vmem:[%s2855_s5 + $0x20] sm:$0xff]  ;;  %v982_v5 = vld [vmem:[%s2855_s5 + $0x28] sm:$0xff]  ;;  %v1889_v6 = vpack.c.bf16 %v888_v3, %v887_v2 }
 0x116   : > { %1845 = vmatpush3.bf16.msra.mxu0 %v1844_v24  ;;  %v1910_v63 = vpack.c.bf16 %v980_v61, %v979_v60  ;;  %v1913_v7 = vpack.c.bf16 %v982_v5, %v981_v4  ;;  %v889_v8 = vld [vmem:[%s2853_s27 + $0x30] sm:$0xff]  ;;  %v890_v9 = vld [vmem:[%s2853_s27 + $0x38] sm:$0xff]  ;;  %v891_v13 = vld [vmem:[%s2853_s27 + $0x40] sm:$0xff] }
 0x117   : > { %1869 = vmatpush3.bf16.msra.mxu1 %v1868_v25  ;;  %1846 = vmatprep.subr.bf16.mxu0 %v2446_v0  ;;  %v983_v10 = vld [vmem:[%s2855_s5 + $0x30] sm:$0xff]  ;;  %v984_v11 = vld [vmem:[%s2855_s5 + $0x38] sm:$0xff]  ;;  %v892_v14 = vld [vmem:[%s2853_s27 + $0x48] sm:$0xff] }
 0x118   : > { %1870 = vmatprep.subr.bf16.mxu1 %v2446_v0  ;;  %v1916_v12 = vpack.c.bf16 %v984_v11, %v983_v10  ;;  %v985_v15 = vld [vmem:[%s2855_s5 + $0x40] sm:$0xff]  ;;  %v986_v16 = vld [vmem:[%s2855_s5 + $0x48] sm:$0xff]  ;;  %v1895_v17 = vpack.c.bf16 %v892_v14, %v891_v13  ;;  %v893_v19 = vld [vmem:[%s2853_s27 + $0x50] sm:$0xff] }
 0x119   : > { %v1919_v18 = vpack.c.bf16 %v986_v16, %v985_v15  ;;  %v894_v20 = vld [vmem:[%s2853_s27 + $0x58] sm:$0xff]  ;;  %v987_v21 = vld [vmem:[%s2855_s5 + $0x50] sm:$0xff]  ;;  %v895_v25 = vld [vmem:[%s2853_s27 + $0x60] sm:$0xff] }
 0x11a   : > { %1848 = vmatpush3.bf16.msra.mxu0 %v1847_v30  ;;  %v988_v22 = vld [vmem:[%s2855_s5 + $0x58] sm:$0xff]  ;;  %v1898_v23 = vpack.c.bf16 %v894_v20, %v893_v19  ;;  %v896_v26 = vld [vmem:[%s2853_s27 + $0x68] sm:$0xff]  ;;  %v989_v27 = vld [vmem:[%s2855_s5 + $0x60] sm:$0xff] }
 0x11b   : > { %1872 = vmatpush3.bf16.msra.mxu1 %v1871_v31  ;;  %1849 = vmatprep.subr.bf16.mxu0 %v2446_v0  ;;  %v1922_v24 = vpack.c.bf16 %v988_v22, %v987_v21  ;;  %v990_v28 = vld [vmem:[%s2855_s5 + $0x68] sm:$0xff]  ;;  %v1901_v29 = vpack.c.bf16 %v896_v26, %v895_v25  ;;  %v897_v31 = vld [vmem:[%s2853_s27 + $0x70] sm:$0xff]  ;;  %v898_v32 = vld [vmem:[%s2853_s27 + $0x78] sm:$0xff] }
 0x11c   : > { %1873 = vmatprep.subr.bf16.mxu1 %v2446_v0  ;;  %v1925_v30 = vpack.c.bf16 %v990_v28, %v989_v27  ;;  %v991_v33 = vld [vmem:[%s2855_s5 + $0x70] sm:$0xff]  ;;  %v992_v34 = vld [vmem:[%s2855_s5 + $0x78] sm:$0xff]  ;;  %v1904_v35 = vpack.c.bf16 %v898_v32, %v897_v31  ;;  %v1511_v38 = vld [vmem:[%s686_s3] ss:$0 sm:$0xff] }
 0x11d   : > { %v1512_v47 = vld [vmem:[%s689_s18] ss:$0 sm:$0xff] }
 0x11e   : > { %1851 = vmatpush3.bf16.msra.mxu0 %v1850_v36  ;;  %v1928_v36 = vpack.c.bf16 %v992_v34, %v991_v33 }
 0x11f   : > { %1875 = vmatpush3.bf16.msra.mxu1 %v1874_v37  ;;  %1852 = vmatprep.subr.bf16.mxu0 %v2446_v0  ;;  %v1510_v37 = vld [vmem:[%s683_s6] ss:$0 sm:$0xff] }
 0x120   : > { %1876 = vmatprep.subr.bf16.mxu1 %v2446_v0 }
 0x122   : > { %1854 = vmatpush3.bf16.msra.mxu0 %v1853_v42 }
 0x123   : > { %1878 = vmatpush3.bf16.msra.mxu1 %v1877_v43  ;;  %1855 = vmatprep.subr.bf16.mxu0 %v2446_v0 }
 0x124   : > { %1879 = vmatprep.subr.bf16.mxu1 %v2446_v0 }
 0x126   : > { %1857 = vmatpush3.bf16.msra.mxu0 %v1856_v48  ;;  %v1513_v48 = vld [vmem:[%s692_s9] ss:$0 sm:$0xff] }
 0x127   : > { %1881 = vmatpush3.bf16.msra.mxu1 %v1880_v49  ;;  %1882 = vmatprep.subr.bf16.mxu0 %v2446_v0 }
 0x128   : > { %1906 = vmatprep.subr.bf16.mxu1 %v2446_v0 }
 0x129   : > { %1657 = vmatmul.mubr.f32.vlgmr.msra.gmra.mrb[0].mxu0 %v2921_v54 }
 0x12a   : > { %1692 = vmatmul.mubr.f32.vlgmr.msra.gmra.mrb[0].mxu1 %v2923_v56  ;;  %1884 = vmatpush3.bf16.msra.mxu0 %v1883_v55 }
 0x12b   : > { %1908 = vmatpush3.bf16.msra.mxu1 %v1907_v57  ;;  %1885 = vmatprep.subr.bf16.mxu0 %v2446_v0 }
 0x12c   : > { %1909 = vmatprep.subr.bf16.mxu1 %v2446_v0  ;;  %1726 = vmatprep.mubr.msk.f32.mxu0 %vm2447_vm0, %v2448_v1 }
 0x12d   : > { %1761 = vmatprep.mubr.msk.f32.mxu1 %vm2447_vm0, %v2448_v1  ;;  %v1892_v1 = vpack.c.bf16 %v890_v9, %v889_v8 }
 0x12e   : > { %1887 = vmatpush3.bf16.msra.mxu0 %v1886_v62 }
 0x12f   : > { %1911 = vmatpush3.bf16.msra.mxu1 %v1910_v63  ;;  %1888 = vmatprep.subr.bf16.mxu0 %v2446_v0 }
 0x130   : > { %1912 = vmatprep.subr.bf16.mxu1 %v2446_v0 }
 0x132   : > { %1890 = vmatpush3.bf16.msra.mxu0 %v1889_v6 }
 0x133   : > { %1914 = vmatpush3.bf16.msra.mxu1 %v1913_v7  ;;  %1891 = vmatprep.subr.bf16.mxu0 %v2446_v0 }
 0x134   : > { %1915 = vmatprep.subr.bf16.mxu1 %v2446_v0 }
 0x136   : > { %1893 = vmatpush3.bf16.msra.mxu0 %v1892_v1 }
 0x137   : > { %1917 = vmatpush3.bf16.msra.mxu1 %v1916_v12  ;;  %1894 = vmatprep.subr.bf16.mxu0 %v2446_v0 }
 0x138   : > { %1918 = vmatprep.subr.bf16.mxu1 %v2446_v0 }
 0x13a   : > { %1896 = vmatpush3.bf16.msra.mxu0 %v1895_v17 }
 0x13b   : > { %1920 = vmatpush3.bf16.msra.mxu1 %v1919_v18  ;;  %1897 = vmatprep.subr.bf16.mxu0 %v2446_v0 }
 0x13c   : > { %1921 = vmatprep.subr.bf16.mxu1 %v2446_v0 }
 0x13e   : > { %1899 = vmatpush3.bf16.msra.mxu0 %v1898_v23 }
 0x13f   : > { %1923 = vmatpush3.bf16.msra.mxu1 %v1922_v24  ;;  %1900 = vmatprep.subr.bf16.mxu0 %v2446_v0 }
 0x140   : > { %1924 = vmatprep.subr.bf16.mxu1 %v2446_v0 }
 0x142   : > { %1902 = vmatpush3.bf16.msra.mxu0 %v1901_v29 }
 0x143   : > { %1926 = vmatpush3.bf16.msra.mxu1 %v1925_v30  ;;  %1903 = vmatprep.subr.bf16.mxu0 %v2446_v0 }
 0x144   : > { %1927 = vmatprep.subr.bf16.mxu1 %v2446_v0 }
 0x146   : > { %1905 = vmatpush3.bf16.msra.mxu0 %v1904_v35 }
 0x147   : > { %1929 = vmatpush3.bf16.msra.mxu1 %v1928_v36 }
 0x149   : > { %1727 = vmatmul.mubr.f32.vlgmr.msra.gmra.mrb[2].mxu0 %v2921_v54 }
 0x14a   : > { %1762 = vmatmul.mubr.f32.vlgmr.msra.gmra.mrb[2].mxu1 %v2923_v56 }
 0x1fc   : > { %v784_v39 = vpop.f32.mrb[0].mxu0 }
 0x1fd   : > { %v785_v0 = vadd.f32 %v1510_v37, %v784_v39  ;;  %v878_v40 = vpop.f32.mrb[0].mxu1  ;;  %v1658_v41 = vpop.f32.mrb[1].mxu0 }
 0x1fe   : > { %v879_v42 = vadd.f32 %v1511_v38, %v878_v40  ;;  %v1693_v43 = vpop.f32.mrb[1].mxu1 }
 0x1ff   : > { %v788_v44 = vmax.f32 %v785_v0, 0.0 }
 0x200   : > { %v882_v45 = vmax.f32 %v879_v42, 0.0 }
 0x202   : > { %v1071_v46 = vmul.f32 %v882_v45, %v788_v44 }
 0x204   : > { %1078 = vst [vmem:[#allocation2] sm:$0xff] (!%p1514_p4), %v1071_v46 }
 0x21c   : > { %v972_v49 = vpop.f32.mrb[2].mxu0 }
 0x21d   : > { %v973_v50 = vadd.f32 %v1512_v47, %v972_v49  ;;  %v1066_v51 = vpop.f32.mrb[2].mxu1  ;;  %v1728_v52 = vpop.f32.mrb[3].mxu0 }
 0x21e   : > { %v1067_v53 = vadd.f32 %v1513_v48, %v1066_v51  ;;  %v1763_v54 = vpop.f32.mrb[3].mxu1  ;;  %1077 = sbr.rel (%p1514_p4) target bundleno = 551 (0x227), region = 108 }
 0x21f   : > { %v976_v55 = vmax.f32 %v973_v50, 0.0 }
 0x220   : > { %v1070_v56 = vmax.f32 %v1067_v53, 0.0 }
 0x222   : > { %v1072_v57 = vmul.f32 %v1070_v56, %v976_v55 }
 0x224   : > { %v1073_v58 = vmul.f32 %v1072_v57, %v1071_v46 }
 0x226   : > { %1079 = vst [vmem:[#allocation3] sm:$0xff] %v1073_v58 }
 0x227 PF: > { %p1515_p2 = scmp.eq.s32.totalorder %s2425_s28, 0 }
 0x228   : > { %v1084_v59 = vld [vmem:[#allocation2] sm:$0xff] (!%p1515_p2) }
 0x229   : > { %1083 = sbr.rel (%p1515_p2) target bundleno = 561 (0x231), region = 112  ;;  %v1085_v61 = vadd.f32 (!%p1515_p2), %v1084_v59, %v1071_v46 }
 0x22b   : > { %1086 = vst [vmem:[#allocation2] sm:$0xff] (!%p1515_p2), %v1085_v61 }
 0x22d   : > { %v1087_v60 = vld [vmem:[#allocation3] sm:$0xff] (!%p1515_p2) }
 0x22e   : > { %v1088_v62 = vadd.f32 (!%p1515_p2), %v1087_v60, %v1073_v58 }
 0x230   : > { %1089 = vst [vmem:[#allocation3] sm:$0xff] %v1088_v62 }
 0x231 PF: > { %p1516_p3 = scmp.ne.s32.totalorder %s2425_s28, 1 }
 0x232   : > { %v1112_v63 = vld [vmem:[#allocation14] sm:$0xff] (!%p1516_p3)  ;;  %v1113_v2 = vld [vmem:[#allocation14 + $0x8] sm:$0xff] (!%p1516_p3)  ;;  %v2449_v4 = vmov (!%p1516_p3), 0.0|0.0   ;;  %v1114_v7 = vld [vmem:[#allocation14 + $0x10] sm:$0xff] (!%p1516_p3)  ;;  %vm2450_vm1 = vmmov (!%p1516_p3), 0   ;;  %v2451_v1 = vmov (!%p1516_p3), 0.0  }
 0x233   : > { %1093 = sbr.rel (%p1516_p3) target bundleno = 816 (0x330), region = 116  ;;  %v1095_v3 = vld [vmem:[#allocation13] sm:$0xff] (!%p1516_p3)  ;;  %1930 = vmatprep.subr.bf16.mxu0 (!%p1516_p3), %v2449_v4  ;;  %1954 = vmatprep.subr.bf16.mxu1 (!%p1516_p3), %v2449_v4  ;;  %v1931_v5 = vpack.c.bf16 (!%p1516_p3), %v1113_v2, %v1112_v63  ;;  %v1096_v6 = vld [vmem:[#allocation13 + $0x8] sm:$0xff] (!%p1516_p3)  ;;  %v1115_v8 = vld [vmem:[#allocation14 + $0x18] sm:$0xff] (!%p1516_p3)  ;;  %s3136_s24 = sld [smem:[#allocation37_spill]] (!%p1516_p3) }
 0x234   : > { %v1955_v9 = vpack.c.bf16 (!%p1516_p3), %v1096_v6, %v1095_v3  ;;  %v1097_v10 = vld [vmem:[#allocation13 + $0x10] sm:$0xff] (!%p1516_p3)  ;;  %v1098_v11 = vld [vmem:[#allocation13 + $0x18] sm:$0xff] (!%p1516_p3)  ;;  %1796 = vmatprep.mubr.msk.f32.mxu0 (!%p1516_p3), %vm2450_vm1, %v2451_v1  ;;  %1831 = vmatprep.mubr.msk.f32.mxu1 (!%p1516_p3), %vm2450_vm1, %v2451_v1  ;;  %v1934_v12 = vpack.c.bf16 (!%p1516_p3), %v1115_v8, %v1114_v7  ;;  %v1116_v14 = vld [vmem:[#allocation14 + $0x20] sm:$0xff] (!%p1516_p3) }
 0x235   : > { %1932 = vmatpush3.bf16.msra.mxu0 (!%p1516_p3), %v1931_v5  ;;  %v1958_v13 = vpack.c.bf16 (!%p1516_p3), %v1098_v11, %v1097_v10  ;;  %v1117_v15 = vld [vmem:[#allocation14 + $0x28] sm:$0xff] (!%p1516_p3)  ;;  %v1099_v16 = vld [vmem:[#allocation13 + $0x20] sm:$0xff] (!%p1516_p3)  ;;  %v1118_v20 = vld [vmem:[#allocation14 + $0x30] sm:$0xff] (!%p1516_p3) }
 0x236   : > { %1956 = vmatpush3.bf16.msra.mxu1 (!%p1516_p3), %v1955_v9  ;;  %1933 = vmatprep.subr.bf16.mxu0 (!%p1516_p3), %v2449_v4  ;;  %v1100_v17 = vld [vmem:[#allocation13 + $0x28] sm:$0xff] (!%p1516_p3)  ;;  %v1937_v18 = vpack.c.bf16 (!%p1516_p3), %v1117_v15, %v1116_v14  ;;  %v1119_v21 = vld [vmem:[#allocation14 + $0x38] sm:$0xff] (!%p1516_p3)  ;;  %v1101_v22 = vld [vmem:[#allocation13 + $0x30] sm:$0xff] (!%p1516_p3) }
 0x237   : > { %1957 = vmatprep.subr.bf16.mxu1 (!%p1516_p3), %v2449_v4  ;;  %v1961_v19 = vpack.c.bf16 (!%p1516_p3), %v1100_v17, %v1099_v16  ;;  %v1102_v23 = vld [vmem:[#allocation13 + $0x38] sm:$0xff] (!%p1516_p3)  ;;  %v1940_v24 = vpack.c.bf16 (!%p1516_p3), %v1119_v21, %v1118_v20  ;;  %v1120_v26 = vld [vmem:[#allocation14 + $0x40] sm:$0xff] (!%p1516_p3)  ;;  %v1121_v27 = vld [vmem:[#allocation14 + $0x48] sm:$0xff] (!%p1516_p3) }
 0x238   : > { %v1964_v25 = vpack.c.bf16 (!%p1516_p3), %v1102_v23, %v1101_v22  ;;  %v1103_v28 = vld [vmem:[#allocation13 + $0x40] sm:$0xff] (!%p1516_p3)  ;;  %v1104_v29 = vld [vmem:[#allocation13 + $0x48] sm:$0xff] (!%p1516_p3)  ;;  %v1943_v30 = vpack.c.bf16 (!%p1516_p3), %v1121_v27, %v1120_v26  ;;  %v1122_v32 = vld [vmem:[#allocation14 + $0x50] sm:$0xff] (!%p1516_p3) }
 0x239   : > { %1935 = vmatpush3.bf16.msra.mxu0 (!%p1516_p3), %v1934_v12  ;;  %v1967_v31 = vpack.c.bf16 (!%p1516_p3), %v1104_v29, %v1103_v28  ;;  %v1123_v33 = vld [vmem:[#allocation14 + $0x58] sm:$0xff] (!%p1516_p3)  ;;  %v1105_v34 = vld [vmem:[#allocation13 + $0x50] sm:$0xff] (!%p1516_p3)  ;;  %v1124_v38 = vld [vmem:[#allocation14 + $0x60] sm:$0xff] (!%p1516_p3) }
 0x23a   : > { %1959 = vmatpush3.bf16.msra.mxu1 %v1958_v13  ;;  %1936 = vmatprep.subr.bf16.mxu0 %v2449_v4  ;;  %v1106_v35 = vld [vmem:[#allocation13 + $0x58] sm:$0xff]  ;;  %v1946_v36 = vpack.c.bf16 %v1123_v33, %v1122_v32  ;;  %v1125_v39 = vld [vmem:[#allocation14 + $0x68] sm:$0xff]  ;;  %v1107_v0 = vld [vmem:[#allocation13 + $0x60] sm:$0xff] }
 0x23b   : > { %1960 = vmatprep.subr.bf16.mxu1 %v2449_v4  ;;  %v1970_v37 = vpack.c.bf16 %v1106_v35, %v1105_v34  ;;  %v1108_v40 = vld [vmem:[#allocation13 + $0x68] sm:$0xff]  ;;  %v1949_v41 = vpack.c.bf16 %v1125_v39, %v1124_v38  ;;  %v1126_v43 = vld [vmem:[#allocation14 + $0x70] sm:$0xff]  ;;  %v1127_v44 = vld [vmem:[#allocation14 + $0x78] sm:$0xff] }
 0x23c   : > { %v1973_v42 = vpack.c.bf16 %v1108_v40, %v1107_v0  ;;  %v1109_v45 = vld [vmem:[#allocation13 + $0x70] sm:$0xff]  ;;  %v1110_v46 = vld [vmem:[#allocation13 + $0x78] sm:$0xff]  ;;  %v1952_v47 = vpack.c.bf16 %v1127_v44, %v1126_v43  ;;  %v1111_v49 = vld [vmem:[#allocation3] sm:$0xff] }
 0x23d   : > { %1938 = vmatpush3.bf16.msra.mxu0 %v1937_v18  ;;  %v1976_v48 = vpack.c.bf16 %v1110_v46, %v1109_v45  ;;  %v1094_v50 = vld [vmem:[#allocation2] sm:$0xff] }
 0x23e   : > { %1962 = vmatpush3.bf16.msra.mxu1 %v1961_v19  ;;  %1939 = vmatprep.subr.bf16.mxu0 %v2449_v4  ;;  %v1517_v53 = vld [vmem:[%s3136_s24] ss:$0 sm:$0xff] }
 0x23f   : > { %1963 = vmatprep.subr.bf16.mxu1 %v2449_v4 }
 0x241   : > { %1941 = vmatpush3.bf16.msra.mxu0 %v1940_v24 }
 0x242   : > { %1965 = vmatpush3.bf16.msra.mxu1 %v1964_v25  ;;  %1942 = vmatprep.subr.bf16.mxu0 %v2449_v4 }
 0x243   : > { %1966 = vmatprep.subr.bf16.mxu1 %v2449_v4 }
 0x245   : > { %1944 = vmatpush3.bf16.msra.mxu0 %v1943_v30 }
 0x246   : > { %1968 = vmatpush3.bf16.msra.mxu1 %v1967_v31  ;;  %1945 = vmatprep.subr.bf16.mxu0 %v2449_v4 }
 0x247   : > { %1969 = vmatprep.subr.bf16.mxu1 %v2449_v4 }
 0x249   : > { %1947 = vmatpush3.bf16.msra.mxu0 %v1946_v36 }
 0x24a   : > { %1971 = vmatpush3.bf16.msra.mxu1 %v1970_v37  ;;  %1948 = vmatprep.subr.bf16.mxu0 %v2449_v4 }
 0x24b   : > { %1972 = vmatprep.subr.bf16.mxu1 %v2449_v4 }
 0x24d   : > { %1950 = vmatpush3.bf16.msra.mxu0 %v1949_v41 }
 0x24e   : > { %1974 = vmatpush3.bf16.msra.mxu1 %v1973_v42  ;;  %1951 = vmatprep.subr.bf16.mxu0 %v2449_v4 }
 0x24f   : > { %1975 = vmatprep.subr.bf16.mxu1 %v2449_v4 }
 0x251   : > { %1953 = vmatpush3.bf16.msra.mxu0 %v1952_v47 }
 0x252   : > { %1977 = vmatpush3.bf16.msra.mxu1 %v1976_v48 }
 0x254   : > { %1797 = vmatmul.mubr.f32.vlgmr.msra.gmra.mrb[0].mxu0 %v1111_v49 }
 0x255   : > { %1832 = vmatmul.mubr.f32.vlgmr.msra.gmra.mrb[0].mxu1 %v1094_v50 }
 0x327   : > { %v1194_v51 = vpop.f32.mrb[0].mxu0 }
 0x328   : > { %v1264_v52 = vpop.f32.mrb[0].mxu1  ;;  %v1798_v54 = vpop.f32.mrb[1].mxu0 }
 0x329   : > { %v1265_v55 = vadd.f32 %v1264_v52, %v1194_v51  ;;  %v1833_v56 = vpop.f32.mrb[1].mxu1 }
 0x32b   : > { %v1275_v57 = vadd.f32 %v1517_v53, %v1265_v55 }
 0x32d   : > { %v1276_v58 = vmax.f32 %v1275_v57, 0.0 }
 0x32f   : > { %1277 = vst [vmem:[#allocation16] sm:$0xff] %v1276_v58 }
 0x330 PF: > { %p2041_p10 = scmp.eq.s32.totalorder %s2552_s14, 1  ;;  %s2452_s23 = smov [#allocation16]  }
 0x331   : > { %s1287_s17 = sshll.u32 %s2452_s23, 4  ;;  %s1288_s17 = int_to_ptr.vmem [resolvable:$true] %s1287_s17 }
 0x332   : > { %s2337_s19 = scalar_lea.vmem %s1288_s17, 128  ;;  %p2344_p7 = scmp.lt.s32.totalorder %s1288_s17, %s1288_s17 }
 0x333   : > { %p2338_p5 = scmp.ne.s32.totalorder %s1288_s17, %s2337_s19  ;;  %p2345_p9 = scmp.lt.s32.totalorder %s2337_s19, %s2337_s19 }
 0x335   : > { %p2339_p11 = pnand %p2338_p5, %p2041_p10  ;;  %p2346_p8 = por %p2345_p9, %p2344_p7 }
 0x337   : > { %p2340_p0 = pneg %p2339_p11 }
 0x339   : > { %p2347_p13 = pnand %p2346_p8, %p2340_p0 }
 0x33b   : > { %2350 = shalt.err (!%p2347_p13)
}
 0x33c   : > { %s3137_s5 = sld [smem:[#allocation38_spill]] }
 0x342   : > { %s2351_s16 = scalar_lea.hbm %s3137_s5, 128 }
 0x343   : > { %p2352_p6 = scmp.ne.s32.totalorder %s3137_s5, %s2351_s16  ;;  %p2357_p4 = scmp.lt.u32.totalorder %s2351_s16, %s3137_s5 }
 0x345   : > { %p2353_p1 = pnand %p2352_p6, %p2041_p10 }
 0x347   : > { %p2354_p12 = pneg %p2353_p1 }
 0x349   : > { %p2359_p2 = pnand %p2357_p4, %p2354_p12 }
 0x34b   : > { %2362 = shalt.err (!%p2359_p2)
}
 0x34c   : > { %2003 = dma.vmem_to_hbm [thread:$0]  (%p2041_p10), %s1288_s17, 128, %s3137_s5, [#allocation6]  }
 0x34d   : > { %2408 = dma.done.wait (%p2041_p10), [#allocation6], 128  }
 0x34e   : > { %2410 = vsyncadd (%p2041_p10), [#allocation6], 4294967168 }
 0x34f PF: > { %s3138_s12 = sld [smem:[#allocation25_spill]]  ;;  %s3139_s3 = sld [smem:[#allocation23_spill]] }
 0x350   : > { %s3140_s27 = sld [smem:[#allocation27_spill]]  ;;  %s3141_s28 = sld [smem:[#allocation24_spill]] }
 0x351   : > { %s3142_s29 = sld [smem:[#allocation26_spill]]  ;;  %s3143_s25 = smov %s2417_s26 }
 0x355   : > { %s27_s30 = sadd.s32 1, %s3138_s12   ;;  %s3144_s26 = smov %s3139_s3 }
 0x356   : > { %p24_p3 = scmp.ge.s32.totalorder %s27_s30, 4  }
 0x358   :  { %26 = sbr.rel (!%p24_p3) target bundleno = 18 (0x12), region = 184 }
 0x35f   :  { %1300 = vsyncpa [#allocation5], 1 }
 0x360   :  { %1302 = vsyncpa [#allocation5 + $0x1], 1 }
 0x361   :  { %1303 = vsyncpa [#allocation8], 1 }
 0x362   :  { %1304 = vsyncpa [#allocation15], 1 }
 0x363   :  { %1305 = vsyncpa [#allocation6], 1 }
 0x364   :  { %1307 = vsyncpa [#allocation6 + $0x1], 1 }

</bundles_post_ra>
